<compile_context>
chip_gen: v5e
topology: v5e:2x2
jax: 0.10.0
libtpu: 0.0.40
codegen_flags: <defaults>
</compile_context>

<pallas_src>
import jax
import jax.numpy as jnp
from jax import lax
from jax.experimental import pallas as pl
from jax.experimental.pallas import tpu as pltpu


def _linear_kernel(w_ref, b_ref, x_ref, ot_ref):
    # w_ref : (2, D)   in VMEM, resident across all grid steps
    # b_ref : (2, 1)   in VMEM, resident
    # x_ref : (TB, D)  in VMEM, streamed per grid step
    # ot_ref: (2, TB)  transposed output tile (batch on the lane axis)
    y = lax.dot_general(
        w_ref[...], x_ref[...],
        dimension_numbers=(((1,), (1,)), ((), ())),  # contract over D
        preferred_element_type=jnp.float32,
    )                                                # -> (2, TB) f32
    ot_ref[...] = (y + b_ref[...]).astype(ot_ref.dtype)


def _choose_batch_tile(B, D):
    """Pick a batch tile that keeps the double-buffered x pipeline well under
    the scoped VMEM limit on every generation (v7x has only 64 MiB physical)."""
    if B <= 512:
        # Single block; block_shape == full array dims satisfies the (8,128)
        # rule by exception, and the whole problem already fits in VMEM.
        return B
    budget = 4 * 1024 * 1024                 # ~4 MiB per x tile (x2 buffers)
    tb = budget // (D * 4)
    tb = max(128, min(1024, (tb // 128) * 128))  # multiple of 128 so the
    return tb                                     # (2, TB) output block is legal


def logistic_regression_forward(x, weight, bias):
    """x: (B, D) f32, weight: (2, D) f32, bias: (2,) f32 -> (B, 2) f32."""
    B, D = x.shape
    out_dim = weight.shape[0]
    TB = _choose_batch_tile(B, D)
    grid = (pl.cdiv(B, TB),)

    b2 = bias.reshape(out_dim, 1)            # (2, 1), broadcast over lanes

    cost = pl.CostEstimate(
        flops=2 * B * D * out_dim,
        transcendentals=0,
        bytes_accessed=B * D * 4 + B * out_dim * 4 + (out_dim * D + out_dim) * 4,
    )

    out_t = pl.pallas_call(
        _linear_kernel,
        out_shape=jax.ShapeDtypeStruct((out_dim, B), jnp.float32),
        grid=grid,
        in_specs=[
            pl.BlockSpec((out_dim, D), lambda i: (0, 0)),   # weight, resident
            pl.BlockSpec((out_dim, 1), lambda i: (0, 0)),   # bias, resident
            pl.BlockSpec((TB, D), lambda i: (i, 0)),        # x, streamed
        ],
        out_specs=pl.BlockSpec((out_dim, TB), lambda i: (0, i)),
        compiler_params=pltpu.CompilerParams(
            dimension_semantics=("parallel",),              # shard batch tiles
        ),
        cost_estimate=cost,
    )(weight, b2, x)

    return out_t.T                           # (B, 2), matches torch layout


if __name__ == "__main__":
    key = jax.random.PRNGKey(0)
    k_x, k_w, k_b = jax.random.split(key, 3)

    batch = 8
    input_dim = 32    # nn.Linear(input_dim, 2)
    out_dim = 2

    x = jax.random.normal(k_x, (batch, input_dim), dtype=jnp.float32)

    # Deterministic parameter init (mimics torch's uniform(-1/sqrt(D), 1/sqrt(D)))
    bound = 1.0 / jnp.sqrt(jnp.float32(input_dim))
    weight = jax.random.uniform(k_w, (out_dim, input_dim), jnp.float32,
                                minval=-bound, maxval=bound)
    bias = jax.random.uniform(k_b, (out_dim,), jnp.float32,
                              minval=-bound, maxval=bound)

    out = logistic_regression_forward(x, weight, bias)
    jax.block_until_ready(out)

    # Sanity check against plain JAX reference (module forward is purely linear:
    # nn.Linear returns logits, no sigmoid in forward).
    ref = x @ weight.T + bias
    assert out.shape == (batch, out_dim)
    assert jnp.allclose(out, ref, atol=1e-5, rtol=1e-5)

    print("KERNEL_OK")
</pallas_src>

<mosaic_0001>
module attributes {stable_mosaic.version = 11 : i64} {
  func.func @_linear_kernel(%arg0: i32, %arg1: memref<2x32xf32, #tpu.memory_space<vmem>>, %arg2: memref<2x1xf32, #tpu.memory_space<vmem>>, %arg3: memref<8x32xf32, #tpu.memory_space<vmem>>, %arg4: memref<2x8xf32, #tpu.memory_space<vmem>>) attributes {dimension_semantics = [#tpu.dimension_semantics<parallel>], iteration_bounds = array<i64: 1>, scalar_prefetch = 0 : i64, scratch_operands = 0 : i64, tpu.core_type = #tpu.core_type<tc>, window_params = [{pipeline_mode = #tpu.pipeline_mode<synchronous>, transform_indices = @transform_0, window_bounds = array<i64: 2, 32>}, {pipeline_mode = #tpu.pipeline_mode<synchronous>, transform_indices = @transform_1, window_bounds = array<i64: 2, 1>}, {transform_indices = @transform_2, window_bounds = array<i64: 8, 32>}, {transform_indices = @transform_3, window_bounds = array<i64: 2, 8>}]} {
    %c0 = arith.constant 0 : index
    %c0_0 = arith.constant 0 : index
    %0 = vector.load %arg1[%c0, %c0_0] : memref<2x32xf32, #tpu.memory_space<vmem>>, vector<2x32xf32>
    %c0_1 = arith.constant 0 : index
    %c0_2 = arith.constant 0 : index
    %1 = vector.load %arg3[%c0_1, %c0_2] : memref<8x32xf32, #tpu.memory_space<vmem>>, vector<8x32xf32>
    %cst = arith.constant dense<0.000000e+00> : vector<2x8xf32>
    %2 = tpu.matmul %0, %1, %cst {dimension_numbers = #tpu.dot_dimension_numbers<[1], [1], [0], [0], [0, 0, 1, 0], [], []>} : vector<2x32xf32>, vector<8x32xf32>, vector<2x8xf32> -> vector<2x8xf32>
    %c0_3 = arith.constant 0 : index
    %c0_4 = arith.constant 0 : index
    %3 = vector.load %arg2[%c0_3, %c0_4] : memref<2x1xf32, #tpu.memory_space<vmem>>, vector<2x1xf32>
    %4 = vector.broadcast %3 : vector<2x1xf32> to vector<2x8xf32>
    %5 = arith.addf %2, %4 : vector<2x8xf32>
    %c0_5 = arith.constant 0 : index
    %c0_6 = arith.constant 0 : index
    %6 = vector.load %arg4[%c0_5, %c0_6] : memref<2x8xf32, #tpu.memory_space<vmem>>, vector<2x8xf32>
    tpu.vector_store %arg4[%c0_5, %c0_6], %5 {strides = array<i32>} : memref<2x8xf32, #tpu.memory_space<vmem>>, vector<2x8xf32>,
    return
  }
  func.func @transform_0(%arg0: i32) -> (i32, i32) {
    %c0_i32 = arith.constant 0 : i32
    %c0_i32_0 = arith.constant 0 : i32
    %c0_i32_1 = arith.constant 0 : i32
    return %c0_i32, %c0_i32_0 : i32, i32
  }
  func.func @transform_1(%arg0: i32) -> (i32, i32) {
    %c0_i32 = arith.constant 0 : i32
    %c0_i32_0 = arith.constant 0 : i32
    %c0_i32_1 = arith.constant 0 : i32
    return %c0_i32, %c0_i32_0 : i32, i32
  }
  func.func @transform_2(%arg0: i32) -> (i32, i32) {
    %c0_i32 = arith.constant 0 : i32
    %c0_i32_0 = arith.constant 0 : i32
    return %arg0, %c0_i32 : i32, i32
  }
  func.func @transform_3(%arg0: i32) -> (i32, i32) {
    %c0_i32 = arith.constant 0 : i32
    %c0_i32_0 = arith.constant 0 : i32
    return %c0_i32, %arg0 : i32, i32
  }
}

</mosaic_0001>

<bundles_post_ra>
// kernel: tpu_custom_call.1
= control target key start
LH: loop header
LB: loop body
LE: loop exit
PB: predicated region body
PF: predicated region fallthrough
CT: control target
= control target key end

     0   :  { %8 = vsyncpa [#allocation3], 0  ;;  %s176_s0 = inlined_call_operand.vmem [shape: f32[2,32], index: 0, kind: input, shape index: {}]   ;;  %s177_s1 = inlined_call_operand.vmem [shape: f32[2,1], index: 1, kind: input, shape index: {}]   ;;  %s178_s2 = inlined_call_operand.hbm [shape: f32[8,32], index: 2, kind: input, shape index: {}]   ;;  %s179_s3 = inlined_call_operand.hbm [shape: f32[2,8], index: 3, kind: output, shape index: {}]  }
   0x1   :  { %9 = vsyncpa [#allocation4], 0  ;;  %s19_s14 = sshll.u32 %s178_s2, 4  ;;  %s141_s15 = smov [#allocation2]   ;;  %s20_s14 = int_to_ptr.hbm [resolvable:$true] %s19_s14 }
   0x2   :  { %s21_s16 = sshll.u32 %s141_s15, 4  ;;  %s22_s16 = int_to_ptr.vmem [resolvable:$true] %s21_s16 }
   0x3   :  { %24 = dma.hbm_to_vmem [thread:$0]  %s20_s14, 128, %s22_s16, [#allocation3]  }
   0x4   :  { %137 = dma.done.wait [#allocation3], 128  }
   0x5   :  { %138 = vsyncadd [#allocation3], 4294967168  ;;  %v142_v0 = vmov 0   ;;  %vm37_vm0 = vcmask 261120   ;;  %v30_v1 = vld [vmem:[#allocation2] sm:$0xff]  ;;  %s143_s2 = smov [#allocation5]  }
   0x6   :  { %88 = vset.pattern.permute.xlu0 %v142_v0  ;;  %v31_v2 = vld [vmem:[%s177_s1] sm:$0x3]  ;;  %83 = vmatpush.xpose.msk.msra.mxu0 %vm37_vm0, %v30_v1  ;;  %s71_s21 = sshll.u32 %s143_s2, 4  ;;  %s73_s24 = sshll.u32 %s179_s3, 4  ;;  %vm64_vm1 = vcmask 58368   ;;  %s72_s21 = int_to_ptr.vmem [resolvable:$true] %s71_s21  ;;  %s74_s24 = int_to_ptr.hbm [resolvable:$true] %s73_s24 }
   0x7   :  { %v29_v3 = vld [vmem:[%s176_s0] sm:$0x3]  ;;  %34 = vperm.xlu0 %88, %v31_v2  }
   0x9   :  { %84 = vmatmul.msk.f32.vlgmr.msra.gmra.mxu0 %vm37_vm0, %v29_v3 }
  0x79   :  { %v35_v4 = vpop.permute.xlu0 %34 }
  0x86   :  { %v61_v5 = vpop.f32.mrf.mxu0 }
  0x87   :  { %v62_v6 = vadd.f32 %v61_v5, %v35_v4 }
  0x89   :  { %65 = vst.msk [vmem:[#allocation5] sm:$0x3] %vm64_vm1, %v62_v6 }
  0x8a   :  { %76 = dma.vmem_to_hbm [thread:$0]  %s72_s21, 32, %s74_s24, [#allocation4]  }
  0x8b   :  { %139 = dma.done.wait [#allocation4], 32  }
  0x8c   :  { %140 = vsyncadd [#allocation4], 4294967264 }
  0x8d   :  { %81 = vsyncpa [#allocation3], 1 }
  0x8e   :  { %82 = vsyncpa [#allocation4], 1 }

</bundles_post_ra>
